<compile_context>
chip_gen: v6e
topology: v6e:2x2x1
jax: 0.10.0
libtpu: 0.0.40
codegen_flags: <defaults>
</compile_context>

<pallas_src>
import jax
import jax.numpy as jnp
from jax.experimental import pallas as pl
from jax.experimental.pallas import tpu as pltpu


# Align the batch tile so 2*tm (the lane extent of every intermediate) is a
# multiple of 128 -> vreg-aligned tower slices and fully dense stores.
_TM_ALIGN = 64


def _round_up(x, m):
    return (x + m - 1) // m * m


def siamese_kernel(
    x_ref,                                   # (in_dim, 2*tm) bf16/f32, both towers packed on lanes
    w1_ref, b1_ref, w2_ref, b2_ref,
    w3_ref, b3_ref, w4_ref, b4_ref,
    St_ref, bias_ref,                        # S^T (out,out); bias (1,1) scalar in SMEM
    out_ref,                                 # (1, tm) lane-dense output block
):
    two_tm = x_ref.shape[1]
    tm = two_tm // 2

    # Cast to f32 right after load (bf16 only used to cut HBM->VMEM traffic;
    # all arithmetic stays f32 so v5e's VPU is never asked to do bf16 math).
    xT = x_ref[...].astype(jnp.float32)                                   # (in, 2*tm)

    # Encoder in transposed form: h^T = W h_prev^T + b  (weights are in the
    # native PyTorch (out_features, in_features) layout; BN already folded
    # into w2/b2, w3/b3; Dropout = identity in eval mode).
    h = jnp.dot(w1_ref[...], xT, preferred_element_type=jnp.float32) + b1_ref[...]
    h = jnp.maximum(h, 0.0)
    h = jnp.dot(w2_ref[...], h, preferred_element_type=jnp.float32) + b2_ref[...]
    h = jnp.maximum(h, 0.0)
    h = jnp.dot(w3_ref[...], h, preferred_element_type=jnp.float32) + b3_ref[...]
    h = jnp.maximum(h, 0.0)
    z = jnp.dot(w4_ref[...], h, preferred_element_type=jnp.float32) + b4_ref[...]  # (out, 2*tm)

    # One stacked S matmul for both towers:  (z @ S)^T == S^T @ z^T.
    zS = jnp.dot(St_ref[...], z, preferred_element_type=jnp.float32)                # (out, 2*tm)

    x, y = z[:, :tm], z[:, tm:]
    xS, yS = zS[:, :tm], zS[:, tm:]

    # diag(x@y.T) - diag(x@S@x.T) - diag(y@S@y.T) + b, fused into one
    # cross-sublane reduce; result is already lane-major (batch on lanes).
    out_ref[...] = (
        jnp.sum(x * (y - xS) - y * yS, axis=0, keepdims=True) + bias_ref[0, 0]
    )


def fold_bn(params):
    """Fold eval-mode BatchNorm scale/shift into the preceding Linear.

    Weights are in PyTorch (out_features, in_features) layout; biases and BN
    scale/shift are (out_features, 1) columns.
    """
    return {
        "w1": params["w1"], "b1": params["b1"],
        "w2": params["sc2"] * params["w2"],
        "b2": params["sc2"] * params["b2"] + params["sh2"],
        "w3": params["sc3"] * params["w3"],
        "b3": params["sc3"] * params["b3"] + params["sh3"],
        "w4": params["w4"], "b4": params["b4"],
        "S_t": params["S"].T, "bias": params["bias"],
    }


def siamese_forward(inp1, inp2, fparams, tile_m=4096, input_dtype=jnp.bfloat16,
                    vmem_limit_bytes=48 * 1024 * 1024):
    """fparams: BN-folded parameters (see fold_bn). Returns shape (N,)."""
    N, in_dim = inp1.shape
    tile_m = _round_up(tile_m, _TM_ALIGN)

    # Batch tile: large (per-grid-step overhead ~0.35us dominates small tiles).
    # The batch-on-lanes layout keeps the footprint small enough that 4096
    # rows fit comfortably inside v7x's 64 MiB VMEM; raise tile_m on v5e/v6e
    # if desired.
    tm = min(tile_m, _round_up(N, _TM_ALIGN))
    # Keep >= 4 grid steps when the batch allows it so
    # dimension_semantics=("parallel",) can shard across both v7x TensorCores.
    if N >= 4 * 512:
        tm = min(tm, _round_up(-(-N // 4), _TM_ALIGN))
    n_pad = _round_up(N, tm)
    n_grid = n_pad // tm

    # Pack both towers along the lane axis in HBM: one fused XLA pass does
    # stack + bf16 cast + pad + transpose (layout plumbing, not compute).
    xs = jnp.stack([inp1, inp2], axis=0).astype(input_dtype)      # (2, N, in)
    if n_pad != N:
        xs = jnp.pad(xs, ((0, 0), (0, n_pad - N), (0, 0)))
    xs = xs.reshape(2, n_grid, tm, in_dim)
    xs = jnp.transpose(xs, (1, 3, 0, 2))                          # (grid, in, 2, tm)
    xs = xs.reshape(n_grid, in_dim, 2 * tm)                       # tower0 | tower1 on lanes

    weight_keys = ("w1", "b1", "w2", "b2", "w3", "b3", "w4", "b4", "S_t")
    weight_args = tuple(fparams[k] for k in weight_keys)

    in_specs = [
        # Packed-tower input streamed over the batch grid (auto double-buffered DMA).
        pl.BlockSpec((None, in_dim, 2 * tm), lambda i: (i, 0, 0)),
    ]
    # Weights/biases stay VMEM-resident (constant index_map -> DMA'd once).
    in_specs += [pl.BlockSpec(w.shape, lambda i: (0, 0)) for w in weight_args]
    # Scalar bias on the scalar path.
    in_specs += [
        pl.BlockSpec((1, 1), lambda i: (0, 0),
                     memory_space=pltpu.MemorySpace.SMEM),
    ]

    mm = (fparams["w1"], fparams["w2"], fparams["w3"], fparams["w4"], fparams["S_t"])
    out_dim = fparams["S_t"].shape[0]
    flops = int(2 * (2 * n_pad) * sum(int(w.shape[0]) * int(w.shape[1]) for w in mm)
                + 6 * n_pad * out_dim)
    bytes_accessed = int(
        xs.size * xs.dtype.itemsize
        + n_pad * 4
        + sum(int(w.size) * w.dtype.itemsize for w in weight_args))

    out = pl.pallas_call(
        siamese_kernel,
        out_shape=jax.ShapeDtypeStruct((n_grid, 1, tm), jnp.float32),
        grid=(n_grid,),
        in_specs=in_specs,
        out_specs=pl.BlockSpec((None, 1, tm), lambda i: (i, 0, 0)),
        compiler_params=pltpu.CompilerParams(
            dimension_semantics=("parallel",),
            vmem_limit_bytes=vmem_limit_bytes,
        ),
        cost_estimate=pl.CostEstimate(
            flops=flops, transcendentals=0, bytes_accessed=bytes_accessed),
    )(xs, *weight_args, fparams["bias"])

    return out.reshape(-1)[:N]  # match PyTorch output shape (N,)


def make_params(key, in_dim, hid_dim, out_dim):
    h2 = hid_dim // 2
    h3 = hid_dim // 3
    eps = 1e-5
    ks = jax.random.split(key, 10)

    def lin(kw, kb, fan_in, fan_out):
        bound = 1.0 / jnp.sqrt(fan_in)
        # PyTorch Linear layout: weight (out_features, in_features), bias column.
        w = jax.random.uniform(kw, (fan_out, fan_in), jnp.float32, -bound, bound)
        b = jax.random.uniform(kb, (fan_out, 1), jnp.float32, -bound, bound)
        return w, b

    w1, b1 = lin(ks[0], ks[1], in_dim, hid_dim)
    w2, b2 = lin(ks[2], ks[3], hid_dim, h2)
    w3, b3 = lin(ks[4], ks[5], h2, h3)
    w4, b4 = lin(ks[6], ks[7], h3, out_dim)

    # BatchNorm1d eval-mode: gamma=1, beta=0, running_mean=0, running_var=1
    # -> scale = 1/sqrt(1+eps), shift = 0.
    sc2 = jnp.full((h2, 1), 1.0 / jnp.sqrt(1.0 + eps), jnp.float32)
    sh2 = jnp.zeros((h2, 1), jnp.float32)
    sc3 = jnp.full((h3, 1), 1.0 / jnp.sqrt(1.0 + eps), jnp.float32)
    sh3 = jnp.zeros((h3, 1), jnp.float32)

    S = jax.random.normal(ks[8], (out_dim, out_dim), jnp.float32)
    bias = jax.random.normal(ks[9], (1, 1), jnp.float32)

    return {
        "w1": w1, "b1": b1,
        "w2": w2, "b2": b2, "sc2": sc2, "sh2": sh2,
        "w3": w3, "b3": b3, "sc3": sc3, "sh3": sh3,
        "w4": w4, "b4": b4,
        "S": S, "bias": bias,
    }


def siamese_ref(inp1, inp2, p):
    """Pure-JAX reference mirroring the PyTorch forward (eval mode)."""
    def enc(v):
        h = jnp.maximum(v @ p["w1"].T + p["b1"].T, 0.0)
        h = jnp.maximum((v2 := v if False else h @ p["w2"].T + p["b2"].T) * p["sc2"].T + p["sh2"].T, 0.0)
        h = jnp.maximum((h @ p["w3"].T + p["b3"].T) * p["sc3"].T + p["sh3"].T, 0.0)
        return h @ p["w4"].T + p["b4"].T

    x = enc(inp1)
    y = enc(inp2)
    out = (jnp.diag(x @ y.T)
           - jnp.diag(x @ p["S"] @ x.T)
           - jnp.diag(y @ p["S"] @ y.T)
           + p["bias"][0, 0])
    return out


if __name__ == "__main__":
    in_dim, hid_dim, out_dim = 32, 24, 8   # hid_dim//2=12, hid_dim//3=8
    N = 8

    key = jax.random.PRNGKey(0)
    k_in1, k_in2, k_par = jax.random.split(key, 3)
    inp1 = jax.random.normal(k_in1, (N, in_dim), jnp.float32)
    inp2 = jax.random.normal(k_in2, (N, in_dim), jnp.float32)
    params = make_params(k_par, in_dim, hid_dim, out_dim)
    fparams = fold_bn(params)

    out = siamese_forward(inp1, inp2, fparams)
    out = jax.block_until_ready(out)

    # Reference sees the same bf16-rounded inputs the kernel streams from HBM.
    q = lambda a: a.astype(jnp.bfloat16).astype(jnp.float32)
    ref = siamese_ref(q(inp1), q(inp2), params)

    assert out.shape == (N,)
    assert jnp.allclose(out, ref, atol=1e-3, rtol=1e-3), (out, ref)

    print("KERNEL_OK")
</pallas_src>

<mosaic_0001>
module attributes {stable_mosaic.version = 11 : i64} {
  func.func @siamese_kernel(%arg0: i32, %arg1: memref<1x32x128xbf16, #tpu.memory_space<vmem>>, %arg2: memref<24x32xf32, #tpu.memory_space<vmem>>, %arg3: memref<24x1xf32, #tpu.memory_space<vmem>>, %arg4: memref<12x24xf32, #tpu.memory_space<vmem>>, %arg5: memref<12x1xf32, #tpu.memory_space<vmem>>, %arg6: memref<8x12xf32, #tpu.memory_space<vmem>>, %arg7: memref<8x1xf32, #tpu.memory_space<vmem>>, %arg8: memref<8x8xf32, #tpu.memory_space<vmem>>, %arg9: memref<8x1xf32, #tpu.memory_space<vmem>>, %arg10: memref<8x8xf32, #tpu.memory_space<vmem>>, %arg11: memref<1x1xf32, #tpu.memory_space<smem>>, %arg12: memref<1x1x64xf32, #tpu.memory_space<vmem>>) attributes {dimension_semantics = [#tpu.dimension_semantics<parallel>], iteration_bounds = array<i64: 1>, scalar_prefetch = 0 : i64, scratch_operands = 0 : i64, tpu.core_type = #tpu.core_type<tc>, window_params = [{transform_indices = @transform_0, window_bounds = array<i64: 1, 32, 128>}, {pipeline_mode = #tpu.pipeline_mode<synchronous>, transform_indices = @transform_1, window_bounds = array<i64: 24, 32>}, {pipeline_mode = #tpu.pipeline_mode<synchronous>, transform_indices = @transform_2, window_bounds = array<i64: 24, 1>}, {pipeline_mode = #tpu.pipeline_mode<synchronous>, transform_indices = @transform_3, window_bounds = array<i64: 12, 24>}, {pipeline_mode = #tpu.pipeline_mode<synchronous>, transform_indices = @transform_4, window_bounds = array<i64: 12, 1>}, {pipeline_mode = #tpu.pipeline_mode<synchronous>, transform_indices = @transform_5, window_bounds = array<i64: 8, 12>}, {pipeline_mode = #tpu.pipeline_mode<synchronous>, transform_indices = @transform_6, window_bounds = array<i64: 8, 1>}, {pipeline_mode = #tpu.pipeline_mode<synchronous>, transform_indices = @transform_7, window_bounds = array<i64: 8, 8>}, {pipeline_mode = #tpu.pipeline_mode<synchronous>, transform_indices = @transform_8, window_bounds = array<i64: 8, 1>}, {pipeline_mode = #tpu.pipeline_mode<synchronous>, transform_indices = @transform_9, window_bounds = array<i64: 8, 8>}, {transform_indices = @transform_10, window_bounds = array<i64: 1, 1>}, {transform_indices = @transform_11, window_bounds = array<i64: 1, 1, 64>}]} {
    %c0 = arith.constant 0 : index
    %c0_0 = arith.constant 0 : index
    %c0_1 = arith.constant 0 : index
    %0 = vector.load %arg1[%c0, %c0_0, %c0_1] : memref<1x32x128xbf16, #tpu.memory_space<vmem>>, vector<1x32x128xbf16>
    %1 = vector.shape_cast %0 : vector<1x32x128xbf16> to vector<32x128xbf16>
    %2 = arith.extf %1 : vector<32x128xbf16> to vector<32x128xf32>
    %c0_2 = arith.constant 0 : index
    %c0_3 = arith.constant 0 : index
    %3 = vector.load %arg2[%c0_2, %c0_3] : memref<24x32xf32, #tpu.memory_space<vmem>>, vector<24x32xf32>
    %cst = arith.constant dense<0.000000e+00> : vector<24x128xf32>
    %4 = tpu.matmul %3, %2, %cst {dimension_numbers = #tpu.dot_dimension_numbers<[1], [0], [0], [1], [0, 0, 1, 1], [], []>} : vector<24x32xf32>, vector<32x128xf32>, vector<24x128xf32> -> vector<24x128xf32>
    %c0_4 = arith.constant 0 : index
    %c0_5 = arith.constant 0 : index
    %5 = vector.load %arg3[%c0_4, %c0_5] : memref<24x1xf32, #tpu.memory_space<vmem>>, vector<24x1xf32>
    %6 = vector.broadcast %5 : vector<24x1xf32> to vector<24x128xf32>
    %7 = arith.addf %4, %6 : vector<24x128xf32>
    %cst_6 = arith.constant 0.000000e+00 : f32
    %8 = vector.broadcast %cst_6 : f32 to vector<24x128xf32>
    %9 = arith.maximumf %7, %8 : vector<24x128xf32>
    %c0_7 = arith.constant 0 : index
    %c0_8 = arith.constant 0 : index
    %10 = vector.load %arg4[%c0_7, %c0_8] : memref<12x24xf32, #tpu.memory_space<vmem>>, vector<12x24xf32>
    %cst_9 = arith.constant dense<0.000000e+00> : vector<12x128xf32>
    %11 = tpu.matmul %10, %9, %cst_9 {dimension_numbers = #tpu.dot_dimension_numbers<[1], [0], [0], [1], [0, 0, 1, 1], [], []>} : vector<12x24xf32>, vector<24x128xf32>, vector<12x128xf32> -> vector<12x128xf32>
    %c0_10 = arith.constant 0 : index
    %c0_11 = arith.constant 0 : index
    %12 = vector.load %arg5[%c0_10, %c0_11] : memref<12x1xf32, #tpu.memory_space<vmem>>, vector<12x1xf32>
    %13 = vector.broadcast %12 : vector<12x1xf32> to vector<12x128xf32>
    %14 = arith.addf %11, %13 : vector<12x128xf32>
    %cst_12 = arith.constant 0.000000e+00 : f32
    %15 = vector.broadcast %cst_12 : f32 to vector<12x128xf32>
    %16 = arith.maximumf %14, %15 : vector<12x128xf32>
    %c0_13 = arith.constant 0 : index
    %c0_14 = arith.constant 0 : index
    %17 = vector.load %arg6[%c0_13, %c0_14] : memref<8x12xf32, #tpu.memory_space<vmem>>, vector<8x12xf32>
    %cst_15 = arith.constant dense<0.000000e+00> : vector<8x128xf32>
    %18 = tpu.matmul %17, %16, %cst_15 {dimension_numbers = #tpu.dot_dimension_numbers<[1], [0], [0], [1], [0, 0, 1, 1], [], []>} : vector<8x12xf32>, vector<12x128xf32>, vector<8x128xf32> -> vector<8x128xf32>
    %c0_16 = arith.constant 0 : index
    %c0_17 = arith.constant 0 : index
    %19 = vector.load %arg7[%c0_16, %c0_17] : memref<8x1xf32, #tpu.memory_space<vmem>>, vector<8x1xf32>
    %20 = vector.broadcast %19 : vector<8x1xf32> to vector<8x128xf32>
    %21 = arith.addf %18, %20 : vector<8x128xf32>
    %cst_18 = arith.constant 0.000000e+00 : f32
    %22 = vector.broadcast %cst_18 : f32 to vector<8x128xf32>
    %23 = arith.maximumf %21, %22 : vector<8x128xf32>
    %c0_19 = arith.constant 0 : index
    %c0_20 = arith.constant 0 : index
    %24 = vector.load %arg8[%c0_19, %c0_20] : memref<8x8xf32, #tpu.memory_space<vmem>>, vector<8x8xf32>
    %cst_21 = arith.constant dense<0.000000e+00> : vector<8x128xf32>
    %25 = tpu.matmul %24, %23, %cst_21 {dimension_numbers = #tpu.dot_dimension_numbers<[1], [0], [0], [1], [0, 0, 1, 1], [], []>} : vector<8x8xf32>, vector<8x128xf32>, vector<8x128xf32> -> vector<8x128xf32>
    %c0_22 = arith.constant 0 : index
    %c0_23 = arith.constant 0 : index
    %26 = vector.load %arg9[%c0_22, %c0_23] : memref<8x1xf32, #tpu.memory_space<vmem>>, vector<8x1xf32>
    %27 = vector.broadcast %26 : vector<8x1xf32> to vector<8x128xf32>
    %28 = arith.addf %25, %27 : vector<8x128xf32>
    %c0_24 = arith.constant 0 : index
    %c0_25 = arith.constant 0 : index
    %29 = vector.load %arg10[%c0_24, %c0_25] : memref<8x8xf32, #tpu.memory_space<vmem>>, vector<8x8xf32>
    %cst_26 = arith.constant dense<0.000000e+00> : vector<8x128xf32>
    %30 = tpu.matmul %29, %28, %cst_26 {dimension_numbers = #tpu.dot_dimension_numbers<[1], [0], [0], [1], [0, 0, 1, 1], [], []>} : vector<8x8xf32>, vector<8x128xf32>, vector<8x128xf32> -> vector<8x128xf32>
    %31 = vector.extract_strided_slice %28 {offsets = [0, 0], sizes = [8, 64], strides = [1, 1]} : vector<8x128xf32> to vector<8x64xf32>
    %32 = vector.extract_strided_slice %28 {offsets = [0, 64], sizes = [8, 64], strides = [1, 1]} : vector<8x128xf32> to vector<8x64xf32>
    %33 = vector.extract_strided_slice %30 {offsets = [0, 0], sizes = [8, 64], strides = [1, 1]} : vector<8x128xf32> to vector<8x64xf32>
    %34 = vector.extract_strided_slice %30 {offsets = [0, 64], sizes = [8, 64], strides = [1, 1]} : vector<8x128xf32> to vector<8x64xf32>
    %35 = arith.subf %32, %33 : vector<8x64xf32>
    %36 = arith.mulf %31, %35 : vector<8x64xf32>
    %37 = arith.mulf %32, %34 : vector<8x64xf32>
    %38 = arith.subf %36, %37 : vector<8x64xf32>
    %cst_27 = arith.constant dense<0.000000e+00> : vector<64xf32>
    %39 = vector.multi_reduction <add>, %38, %cst_27 [0] : vector<8x64xf32> to vector<64xf32>
    %40 = vector.shape_cast %39 : vector<64xf32> to vector<1x64xf32>
    %c0_28 = arith.constant 0 : index
    %c0_29 = arith.constant 0 : index
    %41 = memref.load %arg11[%c0_28, %c0_29] : memref<1x1xf32, #tpu.memory_space<smem>>
    %42 = vector.broadcast %41 : f32 to vector<1x64xf32>
    %43 = arith.addf %40, %42 : vector<1x64xf32>
    %c0_30 = arith.constant 0 : index
    %c0_31 = arith.constant 0 : index
    %c0_32 = arith.constant 0 : index
    %44 = vector.load %arg12[%c0_30, %c0_31, %c0_32] : memref<1x1x64xf32, #tpu.memory_space<vmem>>, vector<1x1x64xf32>
    %45 = vector.shape_cast %44 : vector<1x1x64xf32> to vector<1x64xf32>
    %46 = vector.shape_cast %43 : vector<1x64xf32> to vector<1x1x64xf32>
    tpu.vector_store %arg12[%c0_30, %c0_31, %c0_32], %46 {strides = array<i32>} : memref<1x1x64xf32, #tpu.memory_space<vmem>>, vector<1x1x64xf32>,
    return
  }
  func.func @transform_0(%arg0: i32) -> (i32, i32, i32) {
    %c0_i32 = arith.constant 0 : i32
    %c0_i32_0 = arith.constant 0 : i32
    %c0_i32_1 = arith.constant 0 : i32
    return %arg0, %c0_i32, %c0_i32_0 : i32, i32, i32
  }
  func.func @transform_1(%arg0: i32) -> (i32, i32) {
    %c0_i32 = arith.constant 0 : i32
    %c0_i32_0 = arith.constant 0 : i32
    %c0_i32_1 = arith.constant 0 : i32
    return %c0_i32, %c0_i32_0 : i32, i32
  }
  func.func @transform_2(%arg0: i32) -> (i32, i32) {
    %c0_i32 = arith.constant 0 : i32
    %c0_i32_0 = arith.constant 0 : i32
    %c0_i32_1 = arith.constant 0 : i32
    return %c0_i32, %c0_i32_0 : i32, i32
  }
  func.func @transform_3(%arg0: i32) -> (i32, i32) {
    %c0_i32 = arith.constant 0 : i32
    %c0_i32_0 = arith.constant 0 : i32
    %c0_i32_1 = arith.constant 0 : i32
    return %c0_i32, %c0_i32_0 : i32, i32
  }
  func.func @transform_4(%arg0: i32) -> (i32, i32) {
    %c0_i32 = arith.constant 0 : i32
    %c0_i32_0 = arith.constant 0 : i32
    %c0_i32_1 = arith.constant 0 : i32
    return %c0_i32, %c0_i32_0 : i32, i32
  }
  func.func @transform_5(%arg0: i32) -> (i32, i32) {
    %c0_i32 = arith.constant 0 : i32
    %c0_i32_0 = arith.constant 0 : i32
    %c0_i32_1 = arith.constant 0 : i32
    return %c0_i32, %c0_i32_0 : i32, i32
  }
  func.func @transform_6(%arg0: i32) -> (i32, i32) {
    %c0_i32 = arith.constant 0 : i32
    %c0_i32_0 = arith.constant 0 : i32
    %c0_i32_1 = arith.constant 0 : i32
    return %c0_i32, %c0_i32_0 : i32, i32
  }
  func.func @transform_7(%arg0: i32) -> (i32, i32) {
    %c0_i32 = arith.constant 0 : i32
    %c0_i32_0 = arith.constant 0 : i32
    %c0_i32_1 = arith.constant 0 : i32
    return %c0_i32, %c0_i32_0 : i32, i32
  }
  func.func @transform_8(%arg0: i32) -> (i32, i32) {
    %c0_i32 = arith.constant 0 : i32
    %c0_i32_0 = arith.constant 0 : i32
    %c0_i32_1 = arith.constant 0 : i32
    return %c0_i32, %c0_i32_0 : i32, i32
  }
  func.func @transform_9(%arg0: i32) -> (i32, i32) {
    %c0_i32 = arith.constant 0 : i32
    %c0_i32_0 = arith.constant 0 : i32
    %c0_i32_1 = arith.constant 0 : i32
    return %c0_i32, %c0_i32_0 : i32, i32
  }
  func.func @transform_10(%arg0: i32) -> (i32, i32) {
    %c0_i32 = arith.constant 0 : i32
    %c0_i32_0 = arith.constant 0 : i32
    %c0_i32_1 = arith.constant 0 : i32
    return %c0_i32, %c0_i32_0 : i32, i32
  }
  func.func @transform_11(%arg0: i32) -> (i32, i32, i32) {
    %c0_i32 = arith.constant 0 : i32
    %c0_i32_0 = arith.constant 0 : i32
    %c0_i32_1 = arith.constant 0 : i32
    return %arg0, %c0_i32, %c0_i32_0 : i32, i32, i32
  }
}

</mosaic_0001>

<bundles_post_ra>
// kernel: tpu_custom_call.1
= control target key start
LH: loop header
LB: loop body
LE: loop exit
PB: predicated region body
PF: predicated region fallthrough
CT: control target
= control target key end

     0   :  { %17 = vsyncpa [#allocation4], 0  ;;  %s837_s0 = inlined_call_operand.vmem [shape: bf16[1,32,128], index: 0, kind: input, shape index: {}]   ;;  %s838_s1 = inlined_call_operand.vmem [shape: f32[24,32], index: 1, kind: input, shape index: {}]   ;;  %s839_s2 = inlined_call_operand.vmem [shape: f32[24,1], index: 2, kind: input, shape index: {}]   ;;  %s840_s3 = inlined_call_operand.vmem [shape: f32[12,24], index: 3, kind: input, shape index: {}]   ;;  %s841_s4 = inlined_call_operand.vmem [shape: f32[12,1], index: 4, kind: input, shape index: {}]   ;;  %s842_s5 = inlined_call_operand.vmem [shape: f32[8,12], index: 5, kind: input, shape index: {}]   ;;  %s843_s6 = inlined_call_operand.vmem [shape: f32[8,1], index: 6, kind: input, shape index: {}]   ;;  %s844_s7 = inlined_call_operand.vmem [shape: f32[8,8], index: 7, kind: input, shape index: {}]   ;;  %s845_s8 = inlined_call_operand.vmem [shape: f32[8,1], index: 8, kind: input, shape index: {}]   ;;  %s846_s9 = inlined_call_operand.hbm [shape: f32[8,8], index: 9, kind: input, shape index: {}]   ;;  %s847_s10 = inlined_call_operand.<no memory space> [shape: f32[1,1], index: 10, kind: input, shape index: {}]   ;;  %s848_s11 = inlined_call_operand.hbm [shape: f32[1,1,64], index: 11, kind: output, shape index: {}]  }
   0x1   :  { %18 = vsyncpa [#allocation5], 0  ;;  %s689_s17 = smov [#allocation3]  }
   0x2   :  { %s43_s18 = sshll.u32 %s689_s17, 4  ;;  %s44_s18 = int_to_ptr.vmem [resolvable:$true] %s43_s18 }
   0x3   :  { %s653_s19 = scalar_lea.vmem %s44_s18, 128  ;;  %p658_p1 = scmp.lt.s32.totalorder %s44_s18, %s44_s18 }
   0x4   :  { %p654_p0 = scmp.ne.s32.totalorder %s44_s18, %s653_s19  ;;  %p659_p2 = scmp.lt.s32.totalorder %s653_s19, %s653_s19 }
   0x6   :  { %p660_p3 = por %p659_p2, %p658_p1 }
   0x8   :  { %p661_p4 = pnand %p660_p3, %p654_p0 }
   0xa   :  { %664 = shalt.err (!%p661_p4)
}
   0xb   :  { %46 = dma.hbm_to_vmem [thread:$0]  %s846_s9, 128, %s44_s18, [#allocation4]  }
   0xc   :  { %685 = dma.done.wait [#allocation4], 128  }
   0xd   :  { %686 = vsyncadd [#allocation4], 4294967168  ;;  %v690_v0 = vmov 0.0   ;;  %vm691_vm0 = vmmov 0   ;;  %v692_v1 = vmov 0   ;;  %v574_v2 = vld [vmem:[%s837_s0 + $0x8] sm:$0xff]  }
   0xe   :  { %594 = vmatprep.subr.mxu0 %v690_v0  ;;  %602 = vmatprep.mubr.msk.f32.mxu0 %vm691_vm0, %v690_v0  ;;  %v567_v3 = vld [vmem:[%s837_s0] sm:$0xff]   ;;  %v572_v4 = vunpack.c.l.bf16 %v574_v2  ;;  %v573_v5 = vunpack.c.h.bf16 %v574_v2  ;;  %v65_v6 = vld [vmem:[%s839_s2 + $0x10] sm:$0xff]  ;;  %v64_v9 = vld [vmem:[%s839_s2 + $0x8] sm:$0xff]  ;;  %vm81_vm1 = vcmask 261120   ;;  %vm188_vm2 = vcmask 195584   ;;  %s694_s27 = smov [#allocation6]  }
   0xf   :  { %643 = vset.pattern.permute.xlu0 %v692_v1  ;;  %644 = vset.pattern.permute.xlu1 %v692_v1  ;;  %v63_v7 = vld [vmem:[%s839_s2] sm:$0xff]  ;;  %v569_v8 = vunpack.c.h.bf16 %v567_v3  ;;  %v177_v10 = vld [vmem:[%s841_s4 + $0x8] sm:$0xf]  ;;  %v568_v11 = vunpack.c.l.bf16 %v567_v3  ;;  %v62_v17 = vld [vmem:[%s838_s1 + $0x10] sm:$0xff]  ;;  %vm283_vm3 = vcmask 1043456   ;;  %vm279_vm4 = vcmask 97280  }
  0x10   :  { %78 = vperm.xlu0 %643, %v65_v6   ;;  %595 = vmatpush3.msra.mxu0 %v573_v5  ;;  %v60_v12 = vld [vmem:[%s838_s1] sm:$0xff]  ;;  %v61_v15 = vld [vmem:[%s838_s1 + $0x8] sm:$0xff]  ;;  %vm365_vm5 = vcmask 64512   ;;  %vm529_vm6 = vcmask 523264   ;;  %v538_v6 = vstv %s847_s10  ;;  %s548_s28 = sshll.u32 %s694_s27, 4  ;;  %vm540_vm7 = vcmask 516096   ;;  %s549_s28 = int_to_ptr.vmem [resolvable:$true] %s548_s28 }
  0x11   :  { %68 = vperm.xlu1 %644, %v63_v7   ;;  %596 = vmatprep.subr.mxu0 %v690_v0  ;;  %v176_v13 = vld [vmem:[%s841_s4] sm:$0xff]  ;;  %v175_v34 = vld [vmem:[%s840_s3 + $0x8] sm:$0xf]  ;;  %s665_s29 = scalar_lea.vmem %s549_s28, 16  ;;  %s669_s30 = scalar_lea.vmem %s549_s28, 32 }
  0x12   :  { %597 = vmatpush3.msra.mxu0 %v572_v4  ;;  %v273_v14 = vld [vmem:[%s843_s6] sm:$0xff]  ;;  %p666_p5 = scmp.ne.s32.totalorder %s549_s28, %s665_s29  ;;  %p670_p6 = scmp.lt.s32.totalorder %s549_s28, %s549_s28 }
  0x13   :  { %598 = vmatprep.subr.mxu0 %v690_v0  ;;  %v359_v16 = vld [vmem:[%s845_s8] sm:$0xff]  ;;  %p671_p7 = scmp.lt.s32.totalorder %s669_s30, %s665_s29 }
  0x14   :  { %73 = vperm.xlu0 %643, %v64_v9   ;;  %599 = vmatpush3.msra.mxu0 %v569_v8  ;;  %v174_v18 = vld [vmem:[%s840_s3] sm:$0xff] }
  0x15   :  { %185 = vperm.xlu1 %644, %v177_v10   ;;  %600 = vmatprep.subr.mxu0 %v690_v0  ;;  %v272_v43 = vld [vmem:[%s842_s5] sm:$0xff]  ;;  %s693_s5 = smov 64   ;;  %p672_p8 = por %p671_p7, %p670_p6 }
  0x16   :  { %601 = vmatpush3.msra.mxu0 %v568_v11  ;;  %617 = vmatprep.mubr.msk.f32.mxu1 %vm188_vm2, %v174_v18  ;;  %v358_v49 = vld [vmem:[%s844_s7] sm:$0xff] }
  0x17   :  { %603 = vmatmul.mubr.msk.f32.vlgmr.msra.gmra.mxu0 %vm81_vm1, %v60_v12  ;;  %v439_v53 = vld [vmem:[#allocation3] sm:$0xff]  ;;  %p673_p9 = pnand %p672_p8, %p666_p5 }
  0x18   :  { %180 = vperm.xlu0 %643, %v176_v13   ;;  %605 = vmatprep.mubr.msk.f32.mxu0 %vm691_vm0, %v690_v0 }
  0x19   :  { %276 = vperm.xlu1 %644, %v273_v14  }
  0x1b   :  { %606 = vmatmul.mubr.msk.f32.gmra.mxu0 %vm81_vm1, %v61_v15 }
  0x1c   :  { %362 = vperm.xlu0 %643, %v359_v16   ;;  %608 = vmatprep.mubr.msk.f32.mxu0 %vm691_vm0, %v690_v0 }
  0x1f   :  { %609 = vmatmul.mubr.msk.f32.gmra.mxu0 %vm81_vm1, %v62_v17 }
  0x8b   :  { %v79_v20 = vpop.permute.xlu0 %78 }
  0x8c   :  { %v69_v24 = vpop.permute.xlu1 %68 }
  0x8f   :  { %v74_v25 = vpop.permute.xlu0 %73 }
  0x90   :  { %v186_v35 = vpop.permute.xlu1 %185 }
  0x93   :  { %v181_v38 = vpop.permute.xlu0 %180 }
  0x94   :  { %v277_v44 = vpop.permute.xlu1 %276 }
  0x97   :  { %v363_v50 = vpop.permute.xlu0 %362 }
  0xd7   :  { %v157_v19 = vpop.f32.mrf.mxu0 }
  0xd8   :  { %v158_v30 = vadd.f32 %v157_v19, %v69_v24 }
  0xd9   :  { %v604_v21 = vpop.f32.mrf.mxu0 }
  0xda   :  { %v171_v33 = vmax.f32 %v158_v30, 0.0 }
  0xdb   :  { %v162_v22 = vpop.f32.mrf.mxu0 }
  0xdc   :  { %v163_v27 = vadd.f32 %v162_v22, %v74_v25 }
  0xdd   :  { %v607_v23 = vpop.f32.mrf.mxu0 }
  0xde   :  { %v172_v32 = vmax.f32 %v163_v27, 0.0 }
  0xdf   :  { %v167_v26 = vpop.f32.mrf.mxu0 }
  0xe0   :  { %v168_v28 = vadd.f32 %v167_v26, %v79_v20 }
  0xe1   :  { %v610_v29 = vpop.f32.mrf.mxu0 }
  0xe2   :  { %v173_v31 = vmax.f32 %v168_v28, 0.0 }
  0xe4   :  { %611 = vmatprep.subr.mxu1 %v173_v31 }
  0xe5   :  { %612 = vmatpush3.msra.mxu1 %v173_v31 }
  0xe6   :  { %613 = vmatprep.subr.mxu1 %v172_v32 }
  0xe7   :  { %614 = vmatpush3.msra.mxu1 %v172_v32 }
  0xe8   :  { %615 = vmatprep.subr.mxu1 %v171_v33 }
  0xe9   :  { %616 = vmatpush3.msra.mxu1 %v171_v33 }
  0xea   :  { %618 = vmatmul.mubr.msk.f32.vlgmr.msra.gmra.mxu1 %vm188_vm2, %v175_v34  ;;  %620 = vmatprep.subr.mxu1 %v690_v0 }
  0xeb   :  { %624 = vmatprep.mubr.msk.f32.mxu1 %vm691_vm0, %v690_v0 }
 0x1aa   :  { %v619_v36 = vpop.f32.mrf.mxu1 }
 0x1ab   :  { %v267_v37 = vadd.f32 %v619_v36, %v186_v35 }
 0x1ac   :  { %v261_v39 = vpop.f32.mrf.mxu1 }
 0x1ad   :  { %v271_v40 = vmax.f32 %v267_v37, 0.0  ;;  %v262_v41 = vadd.f32 %v261_v39, %v181_v38 }
 0x1af   :  { %v270_v42 = vmax.f32 %v262_v41, 0.0  ;;  %621 = vmatpush3.msk.msra.mxu1 %vm283_vm3, %v271_v40 }
 0x1b0   :  { %622 = vmatprep.subr.mxu1 %v690_v0 }
 0x1b1   :  { %623 = vmatpush3.msra.mxu1 %v270_v42 }
 0x1b2   :  { %625 = vmatmul.mubr.msk.f32.vlgmr.msra.gmra.mxu1 %vm279_vm4, %v272_v43  ;;  %627 = vmatprep.subr.mxu1 %v690_v0 }
 0x1b3   :  { %629 = vmatprep.mubr.msk.f32.mxu1 %vm691_vm0, %v690_v0 }
 0x272   :  { %v353_v45 = vpop.f32.mrf.mxu1 }
 0x273   :  { %v354_v46 = vadd.f32 %v353_v45, %v277_v44 }
 0x274   :  { %v626_v47 = vpop.f32.mrf.mxu1 }
 0x275   :  { %v357_v48 = vmax.f32 %v354_v46, 0.0 }
 0x277   :  { %628 = vmatpush3.msra.mxu1 %v357_v48 }
 0x278   :  { %630 = vmatmul.mubr.msk.f32.vlgmr.msra.gmra.mxu1 %vm365_vm5, %v358_v49  ;;  %632 = vmatprep.subr.mxu1 %v690_v0 }
 0x279   :  { %634 = vmatprep.mubr.msk.f32.mxu1 %vm691_vm0, %v690_v0 }
 0x338   :  { %v435_v51 = vpop.f32.mrf.mxu1 }
 0x339   :  { %v436_v52 = vadd.f32 %v435_v51, %v363_v50 }
 0x33a   :  { %v631_v54 = vpop.f32.mrf.mxu1 }
 0x33b   :  { %633 = vmatpush3.msra.mxu1 %v436_v52 }
 0x33c   :  { %635 = vmatmul.mubr.msk.f32.vlgmr.msra.gmra.mxu1 %vm365_vm5, %v439_v53 }
 0x3fc   :  { %v509_v55 = vpop.f32.mrf.mxu1 }
 0x3fd   :  { %514 = vrot.lane.b32.xlu1 %v509_v55, %s693_s5  ;;  %v523_v57 = vmul.f32 %v509_v55, %v436_v52 }
 0x3fe   :  { %v636_v56 = vpop.f32.mrf.mxu1 }
 0x401   :  { %525 = vrot.lane.b32.xlu1 %v523_v57, %s693_s5 }
 0x46f   :  { %v515_v58 = vpop.permute.xlu1 %514 }
 0x470   :  { %v517_v59 = vsub.f32 %v436_v52, %v515_v58 }
 0x472   :  { %519 = vrot.lane.b32.xlu0 %v517_v59, %s693_s5 }
 0x473   :  { %v526_v62 = vpop.permute.xlu1 %525 }
 0x4e4   :  { %v520_v60 = vpop.permute.xlu0 %519 }
 0x4e5   :  { %v522_v61 = vmul.f32 %v520_v60, %v436_v52 }
 0x4e7   :  { %v528_v63 = vsub.f32 %v522_v61, %v526_v62 }
 0x4e9   :  { %v530_v0 = vsel %vm529_vm6, %v528_v63, 0.0 }
 0x4ea   :  { %v531_v1 = vrot.slane %v530_v0, 4 }
 0x4ec   :  { %v532_v2 = vadd.f32 %v531_v1, %v530_v0 }
 0x4ee   :  { %v533_v3 = vrot.slane %v532_v2, 2 }
 0x4f0   :  { %v534_v4 = vadd.f32 %v533_v3, %v532_v2 }
 0x4f2   :  { %v535_v5 = vrot.slane %v534_v4, 1 }
 0x4f4   :  { %v536_v7 = vadd.f32 %v535_v5, %v534_v4 }
 0x4f6   :  { %v539_v8 = vadd.f32 %v538_v6, %v536_v7 }
 0x4f8   :  { %541 = vst.msk [vmem:[#allocation6] sm:$0x1] %vm540_vm7, %v539_v8 }
 0x4f9   :  { %676 = shalt.err (!%p673_p9)
}
 0x4fa   :  { %551 = dma.vmem_to_hbm [thread:$0]  %s549_s28, 16, %s848_s11, [#allocation5]  }
 0x4fb   :  { %687 = dma.done.wait [#allocation5], 16  }
 0x4fc   :  { %688 = vsyncadd [#allocation5], 4294967280 }
 0x4fd   :  { %555 = vsyncpa [#allocation4], 1 }
 0x4fe   :  { %556 = vsyncpa [#allocation5], 1 }

</bundles_post_ra>
